<compile_context>
chip_gen: v7x
topology: tpu7x:2x2x1
jax: 0.10.0
libtpu: 0.0.40
codegen_flags: <defaults>
</compile_context>

<pallas_src>
import functools
import math

import jax
import jax.numpy as jnp
from jax.experimental import pallas as pl
from jax.experimental.pallas import tpu as pltpu


def _round_up(n, m):
    return ((n + m - 1) // m) * m


def _device_kind():
    try:
        return jax.devices()[0].device_kind.lower()
    except Exception:  # pragma: no cover - defensive
        return ""


# ----------------------------- Pallas kernel ---------------------------------
def _client_net2_kernel(x_ref, w1_ref, b1_ref, w2_ref, b2_ref, o_ref, *,
                        cards, n_cont, tanh_dtype):
    xk = x_ref[...]                       # (TB, K_pad) f32: [cont | codes | 0]
    tb, k_pad = xk.shape

    # Build the fused LHS (continuous feats + concatenated one-hot) purely
    # elementwise with one iota:
    #   lane j <  n_cont               -> continuous feature j
    #   lane n_cont + off_i + (code-1) -> 1.0 for categorical feature i
    # Codes are clamped to their own segment (invalid/0 codes cannot light a
    # neighbouring feature's lane).
    col = jax.lax.broadcasted_iota(jnp.int32, (tb, k_pad), 1)
    match = jnp.zeros((tb, k_pad), dtype=jnp.bool_)
    off = n_cont
    for i, ci in enumerate(cards):
        code = xk[:, n_cont + i:n_cont + i + 1].astype(jnp.int32) - 1
        code = jnp.clip(code, 0, ci - 1) + off
        match = jnp.logical_or(match, col == code)
        off += ci
    cont_only = jnp.where(col < n_cont, xk, 0.0)          # zero the code lanes
    lhs = (cont_only + match.astype(jnp.float32)).astype(jnp.bfloat16)

    # Layer 1: single MXU matmul against the full padded (K_pad, H1) W1
    # (the PyTorch one-hot/concat preprocessing is fused into this matmul).
    acc = jnp.dot(lhs, w1_ref[...], preferred_element_type=jnp.float32)
    # tanh in bf16 on chips with a bf16 EUP (v6e/v7x), f32 elsewhere.
    h = jnp.tanh((acc + b1_ref[...]).astype(tanh_dtype))

    # Layer 2 (no activation). Output block is lane-dense (H2 padded to 128).
    out = jnp.dot(h.astype(jnp.bfloat16), w2_ref[...],
                  preferred_element_type=jnp.float32) + b2_ref[...]
    o_ref[...] = out.astype(o_ref.dtype)


# ------------------------------- wrapper --------------------------------------
def client_leakyrelu_net2_forward(x, params, *, cards=(11, 2, 7, 2, 2),
                                  n_cont=5, block_b=2048, min_grid_steps=None,
                                  bf16_tanh=None):
    """x: (B, n_cont + len(cards)) raw features (categoricals are 1-based codes).

    Returns (B, n_hidden_2) float32.
    """
    B, F = x.shape
    assert F == n_cont + len(cards), (F, n_cont, len(cards))
    w1, b1, w2, b2 = params["w1"], params["b1"], params["w2"], params["b2"]
    K_pad, H1 = w1.shape            # (32, 1024): rows 0-4 cont, 5-28 cat, 29-31 zero
    H2_pad = w2.shape[1]            # 128 (lane-dense output)
    n_out = params["n_out"]         # 64

    kind = _device_kind()
    if bf16_tanh is None:
        # bf16 EUP exists on v6e / v7x only; v5e (and older) keep f32 tanh.
        bf16_tanh = ("v6" in kind) or ("v7" in kind)
    if min_grid_steps is None:
        # v7x has 2 TensorCores per chip: keep >=2 grid steps so the batch can
        # shard across both.  Single-TC chips prefer grid=1 (no per-step cost).
        min_grid_steps = 2 if "v7" in kind else 1

    # Batch tiling with minimal padding: fewest steps that respect block_b and
    # min_grid_steps, TB rounded up to the f32 sublane multiple (8).
    steps = max(min_grid_steps, pl.cdiv(B, block_b))
    TB = _round_up(pl.cdiv(B, steps), 8)
    B_pad = TB * steps

    # Kernel input block: lanes [0, n_cont) = continuous features,
    # [n_cont, F) = categorical codes, rest zero. Padded batch rows are all
    # zero (codes clamp to category 0 in-kernel); their outputs are sliced off.
    xk = jnp.zeros((B_pad, K_pad), jnp.float32)
    xk = xk.at[:B, :F].set(x.astype(jnp.float32))

    def _call(tanh_dtype):
        kernel = functools.partial(_client_net2_kernel, cards=tuple(cards),
                                   n_cont=n_cont, tanh_dtype=tanh_dtype)
        return pl.pallas_call(
            kernel,
            out_shape=jax.ShapeDtypeStruct((B_pad, H2_pad), jnp.float32),
            grid_spec=pltpu.PrefetchScalarGridSpec(
                num_scalar_prefetch=0,
                grid=(steps,),
                in_specs=[
                    pl.BlockSpec((TB, K_pad), lambda i: (i, 0)),    # x (batch-tiled)
                    pl.BlockSpec((K_pad, H1), lambda i: (0, 0)),    # W1 (VMEM-resident)
                    pl.BlockSpec((1, H1), lambda i: (0, 0)),        # b1
                    pl.BlockSpec((H1, H2_pad), lambda i: (0, 0)),   # W2 (H2 padded to 128)
                    pl.BlockSpec((1, H2_pad), lambda i: (0, 0)),    # b2
                ],
                out_specs=pl.BlockSpec((TB, H2_pad), lambda i: (i, 0)),
            ),
            compiler_params=pltpu.CompilerParams(
                dimension_semantics=("parallel",),
                # headroom for TB up to 2048 (≈16 MiB live) above v5e's 16 MiB
                # default scoped limit; well under physical VMEM on all gens.
                vmem_limit_bytes=48 * 1024 * 1024),
        )(xk, w1, b1, w2, b2)

    try:
        out = _call(jnp.bfloat16 if bf16_tanh else jnp.float32)
    except Exception:
        if not bf16_tanh:
            raise
        # Safe fallback for targets without a bf16 transcendental path.
        out = _call(jnp.float32)

    return out[:B, :n_out]


# --------------------------- parameter creation --------------------------------
def init_params(key, cards, *, n_cont=5, n_hidden_1=1024, n_hidden_2=64,
                mxu_dtype=jnp.bfloat16):
    """Mimics nn.Linear's U(-1/sqrt(fan_in), +1/sqrt(fan_in)) init.

    Weights are stored (in, out); W1's contraction dim is zero-padded 29->32
    (so the fused one-hot LHS build uses a single lane-padded buffer) and W2 /
    b2 are zero-padded 64->128 output columns for lane-dense stores.
    """
    in_dim = n_cont + sum(cards)                    # 29
    k_pad = _round_up(in_dim, 8)                    # 32
    h2_pad = _round_up(n_hidden_2, 128)             # 128
    k1, k2, k3, k4 = jax.random.split(key, 4)
    bound1 = 1.0 / math.sqrt(in_dim)
    w1 = jax.random.uniform(k1, (in_dim, n_hidden_1), jnp.float32, -bound1, bound1)
    b1 = jax.random.uniform(k2, (1, n_hidden_1), jnp.float32, -bound1, bound1)
    bound2 = 1.0 / math.sqrt(n_hidden_1)
    w2 = jax.random.uniform(k3, (n_hidden_1, n_hidden_2), jnp.float32, -bound2, bound2)
    b2 = jax.random.uniform(k4, (1, n_hidden_2), jnp.float32, -bound2, bound2)

    w1_pad = jnp.zeros((k_pad, n_hidden_1), jnp.float32).at[:in_dim].set(w1)
    w2_pad = jnp.zeros((n_hidden_1, h2_pad), jnp.float32).at[:, :n_hidden_2].set(w2)
    b2_pad = jnp.zeros((1, h2_pad), jnp.float32).at[:, :n_hidden_2].set(b2)
    return {
        "w1": w1_pad.astype(mxu_dtype),
        "b1": b1,
        "w2": w2_pad.astype(mxu_dtype),
        "b2": b2_pad,
        "n_out": n_hidden_2,
        "in_dim": in_dim,
    }


def reference_forward(x, params, *, cards=(11, 2, 7, 2, 2), n_cont=5):
    """Plain-JAX f32 reference matching the PyTorch forward (client=1 path)."""
    in_dim = params["in_dim"]
    n_out = params["n_out"]
    z = x[:, n_cont:].astype(jnp.int32) - 1
    pieces = [x[:, :n_cont].astype(jnp.float32)]
    for i, ci in enumerate(cards):
        pieces.append(jax.nn.one_hot(z[:, i], ci, dtype=jnp.float32))
    x_enc = jnp.concatenate(pieces, axis=1)                       # (B, 29)
    w1 = params["w1"][:in_dim].astype(jnp.float32)
    h = jnp.tanh(x_enc @ w1 + params["b1"])
    w2 = params["w2"][:, :n_out].astype(jnp.float32)
    return h @ w2 + params["b2"][:, :n_out]


# --------------------------------- main -----------------------------------------
if __name__ == "__main__":
    key = jax.random.PRNGKey(0)
    kp, kc, kz = jax.random.split(key, 3)

    cards = (11, 2, 7, 2, 2)   # client=1 categorical cardinalities (29 encoded)
    n_cont = 5
    B = 2
    H2 = 64

    params = init_params(kp, cards, n_cont=n_cont, n_hidden_1=1024, n_hidden_2=H2)

    # Raw input: 5 continuous features + 5 categorical codes in [1, card_i].
    x_cont = jax.random.normal(kc, (B, n_cont), jnp.float32)
    zkeys = jax.random.split(kz, len(cards))
    cat_cols = [jax.random.randint(k, (B, 1), 1, ci + 1).astype(jnp.float32)
                for k, ci in zip(zkeys, cards)]
    x = jnp.concatenate([x_cont] + cat_cols, axis=1)              # (B, 10)

    out = client_leakyrelu_net2_forward(x, params, cards=cards, n_cont=n_cont)
    out = jax.block_until_ready(out)

    ref = reference_forward(x, params, cards=cards, n_cont=n_cont)
    assert out.shape == (B, H2), out.shape
    # bf16 MXU operands (and bf16 tanh on v6e/v7x) with f32 accumulation:
    # allow ~1e-2 level error vs the f32 reference.
    assert jnp.allclose(out, ref, atol=3e-2, rtol=3e-2), (
        "mismatch vs reference; max abs err = %f"
        % float(jnp.max(jnp.abs(out - ref))))

    # TODO(synk): the PyTorch module's host-side np.isnan(...) raise on the
    # encoded input is host control flow with no in-kernel equivalent; omitted.
    print("KERNEL_OK")
</pallas_src>

<mosaic_0001>
module attributes {stable_mosaic.version = 11 : i64} {
  func.func @_client_net2_kernel(%arg0: i32, %arg1: memref<8x32xf32, #tpu.memory_space<vmem>>, %arg2: memref<32x1024xbf16, #tpu.memory_space<vmem>>, %arg3: memref<1x1024xf32, #tpu.memory_space<vmem>>, %arg4: memref<1024x128xbf16, #tpu.memory_space<vmem>>, %arg5: memref<1x128xf32, #tpu.memory_space<vmem>>, %arg6: memref<8x128xf32, #tpu.memory_space<vmem>>) attributes {dimension_semantics = [#tpu.dimension_semantics<parallel>], iteration_bounds = array<i64: 1>, scalar_prefetch = 0 : i64, scratch_operands = 0 : i64, tpu.core_type = #tpu.core_type<tc>, window_params = [{transform_indices = @transform_0, window_bounds = array<i64: 8, 32>}, {pipeline_mode = #tpu.pipeline_mode<synchronous>, transform_indices = @transform_1, window_bounds = array<i64: 32, 1024>}, {pipeline_mode = #tpu.pipeline_mode<synchronous>, transform_indices = @transform_2, window_bounds = array<i64: 1, 1024>}, {pipeline_mode = #tpu.pipeline_mode<synchronous>, transform_indices = @transform_3, window_bounds = array<i64: 1024, 128>}, {pipeline_mode = #tpu.pipeline_mode<synchronous>, transform_indices = @transform_4, window_bounds = array<i64: 1, 128>}, {transform_indices = @transform_5, window_bounds = array<i64: 8, 128>}]} {
    %c0 = arith.constant 0 : index
    %c0_0 = arith.constant 0 : index
    %0 = vector.load %arg1[%c0, %c0_0] : memref<8x32xf32, #tpu.memory_space<vmem>>, vector<8x32xf32>
    %1 = tpu.iota {dimensions = array<i32: 1>} : vector<8x32xi32>
    %false = arith.constant false
    %2 = vector.broadcast %false : i1 to vector<8x32xi1>
    %3 = vector.extract_strided_slice %0 {offsets = [0, 5], sizes = [8, 1], strides = [1, 1]} : vector<8x32xf32> to vector<8x1xf32>
    %4 = arith.fptosi %3 : vector<8x1xf32> to vector<8x1xi32>
    %c1_i32 = arith.constant 1 : i32
    %5 = vector.broadcast %c1_i32 : i32 to vector<8x1xi32>
    %6 = arith.subi %4, %5 : vector<8x1xi32>
    %c0_i32 = arith.constant 0 : i32
    %c10_i32 = arith.constant 10 : i32
    %7 = vector.broadcast %c0_i32 : i32 to vector<8x1xi32>
    %8 = arith.maxsi %7, %6 : vector<8x1xi32>
    %9 = vector.broadcast %c10_i32 : i32 to vector<8x1xi32>
    %10 = arith.minsi %9, %8 : vector<8x1xi32>
    %c5_i32 = arith.constant 5 : i32
    %11 = vector.broadcast %c5_i32 : i32 to vector<8x1xi32>
    %12 = arith.addi %10, %11 : vector<8x1xi32>
    %13 = vector.broadcast %12 : vector<8x1xi32> to vector<8x32xi32>
    %14 = arith.cmpi eq, %1, %13 : vector<8x32xi32>
    %15 = arith.ori %2, %14 : vector<8x32xi1>
    %16 = vector.extract_strided_slice %0 {offsets = [0, 6], sizes = [8, 1], strides = [1, 1]} : vector<8x32xf32> to vector<8x1xf32>
    %17 = arith.fptosi %16 : vector<8x1xf32> to vector<8x1xi32>
    %c1_i32_1 = arith.constant 1 : i32
    %18 = vector.broadcast %c1_i32_1 : i32 to vector<8x1xi32>
    %19 = arith.subi %17, %18 : vector<8x1xi32>
    %c0_i32_2 = arith.constant 0 : i32
    %c1_i32_3 = arith.constant 1 : i32
    %20 = vector.broadcast %c0_i32_2 : i32 to vector<8x1xi32>
    %21 = arith.maxsi %20, %19 : vector<8x1xi32>
    %22 = vector.broadcast %c1_i32_3 : i32 to vector<8x1xi32>
    %23 = arith.minsi %22, %21 : vector<8x1xi32>
    %c16_i32 = arith.constant 16 : i32
    %24 = vector.broadcast %c16_i32 : i32 to vector<8x1xi32>
    %25 = arith.addi %23, %24 : vector<8x1xi32>
    %26 = vector.broadcast %25 : vector<8x1xi32> to vector<8x32xi32>
    %27 = arith.cmpi eq, %1, %26 : vector<8x32xi32>
    %28 = arith.ori %15, %27 : vector<8x32xi1>
    %29 = vector.extract_strided_slice %0 {offsets = [0, 7], sizes = [8, 1], strides = [1, 1]} : vector<8x32xf32> to vector<8x1xf32>
    %30 = arith.fptosi %29 : vector<8x1xf32> to vector<8x1xi32>
    %c1_i32_4 = arith.constant 1 : i32
    %31 = vector.broadcast %c1_i32_4 : i32 to vector<8x1xi32>
    %32 = arith.subi %30, %31 : vector<8x1xi32>
    %c0_i32_5 = arith.constant 0 : i32
    %c6_i32 = arith.constant 6 : i32
    %33 = vector.broadcast %c0_i32_5 : i32 to vector<8x1xi32>
    %34 = arith.maxsi %33, %32 : vector<8x1xi32>
    %35 = vector.broadcast %c6_i32 : i32 to vector<8x1xi32>
    %36 = arith.minsi %35, %34 : vector<8x1xi32>
    %c18_i32 = arith.constant 18 : i32
    %37 = vector.broadcast %c18_i32 : i32 to vector<8x1xi32>
    %38 = arith.addi %36, %37 : vector<8x1xi32>
    %39 = vector.broadcast %38 : vector<8x1xi32> to vector<8x32xi32>
    %40 = arith.cmpi eq, %1, %39 : vector<8x32xi32>
    %41 = arith.ori %28, %40 : vector<8x32xi1>
    %42 = vector.extract_strided_slice %0 {offsets = [0, 8], sizes = [8, 1], strides = [1, 1]} : vector<8x32xf32> to vector<8x1xf32>
    %43 = arith.fptosi %42 : vector<8x1xf32> to vector<8x1xi32>
    %c1_i32_6 = arith.constant 1 : i32
    %44 = vector.broadcast %c1_i32_6 : i32 to vector<8x1xi32>
    %45 = arith.subi %43, %44 : vector<8x1xi32>
    %c0_i32_7 = arith.constant 0 : i32
    %c1_i32_8 = arith.constant 1 : i32
    %46 = vector.broadcast %c0_i32_7 : i32 to vector<8x1xi32>
    %47 = arith.maxsi %46, %45 : vector<8x1xi32>
    %48 = vector.broadcast %c1_i32_8 : i32 to vector<8x1xi32>
    %49 = arith.minsi %48, %47 : vector<8x1xi32>
    %c25_i32 = arith.constant 25 : i32
    %50 = vector.broadcast %c25_i32 : i32 to vector<8x1xi32>
    %51 = arith.addi %49, %50 : vector<8x1xi32>
    %52 = vector.broadcast %51 : vector<8x1xi32> to vector<8x32xi32>
    %53 = arith.cmpi eq, %1, %52 : vector<8x32xi32>
    %54 = arith.ori %41, %53 : vector<8x32xi1>
    %55 = vector.extract_strided_slice %0 {offsets = [0, 9], sizes = [8, 1], strides = [1, 1]} : vector<8x32xf32> to vector<8x1xf32>
    %56 = arith.fptosi %55 : vector<8x1xf32> to vector<8x1xi32>
    %c1_i32_9 = arith.constant 1 : i32
    %57 = vector.broadcast %c1_i32_9 : i32 to vector<8x1xi32>
    %58 = arith.subi %56, %57 : vector<8x1xi32>
    %c0_i32_10 = arith.constant 0 : i32
    %c1_i32_11 = arith.constant 1 : i32
    %59 = vector.broadcast %c0_i32_10 : i32 to vector<8x1xi32>
    %60 = arith.maxsi %59, %58 : vector<8x1xi32>
    %61 = vector.broadcast %c1_i32_11 : i32 to vector<8x1xi32>
    %62 = arith.minsi %61, %60 : vector<8x1xi32>
    %c27_i32 = arith.constant 27 : i32
    %63 = vector.broadcast %c27_i32 : i32 to vector<8x1xi32>
    %64 = arith.addi %62, %63 : vector<8x1xi32>
    %65 = vector.broadcast %64 : vector<8x1xi32> to vector<8x32xi32>
    %66 = arith.cmpi eq, %1, %65 : vector<8x32xi32>
    %67 = arith.ori %54, %66 : vector<8x32xi1>
    %c5_i32_12 = arith.constant 5 : i32
    %68 = vector.broadcast %c5_i32_12 : i32 to vector<8x32xi32>
    %69 = arith.cmpi slt, %1, %68 : vector<8x32xi32>
    %cst = arith.constant 0.000000e+00 : f32
    %70 = vector.broadcast %cst : f32 to vector<8x32xf32>
    %71 = arith.select %69, %0, %70 : vector<8x32xi1>, vector<8x32xf32>
    %72 = arith.extui %67 : vector<8x32xi1> to vector<8x32xi32>
    %73 = arith.sitofp %72 : vector<8x32xi32> to vector<8x32xf32>
    %74 = arith.addf %71, %73 : vector<8x32xf32>
    %75 = arith.truncf %74 : vector<8x32xf32> to vector<8x32xbf16>
    %c0_13 = arith.constant 0 : index
    %c0_14 = arith.constant 0 : index
    %76 = vector.load %arg2[%c0_13, %c0_14] : memref<32x1024xbf16, #tpu.memory_space<vmem>>, vector<32x1024xbf16>
    %cst_15 = arith.constant dense<0.000000e+00> : vector<8x1024xf32>
    %77 = tpu.matmul %75, %76, %cst_15 {dimension_numbers = #tpu.dot_dimension_numbers<[1], [0], [0], [1], [0, 0, 1, 1], [], []>} : vector<8x32xbf16>, vector<32x1024xbf16>, vector<8x1024xf32> -> vector<8x1024xf32>
    %c0_16 = arith.constant 0 : index
    %c0_17 = arith.constant 0 : index
    %78 = vector.load %arg3[%c0_16, %c0_17] : memref<1x1024xf32, #tpu.memory_space<vmem>>, vector<1x1024xf32>
    %79 = vector.broadcast %78 : vector<1x1024xf32> to vector<8x1024xf32>
    %80 = arith.addf %77, %79 : vector<8x1024xf32>
    %81 = math.tanh %80 : vector<8x1024xf32>
    %82 = arith.truncf %81 : vector<8x1024xf32> to vector<8x1024xbf16>
    %c0_18 = arith.constant 0 : index
    %c0_19 = arith.constant 0 : index
    %83 = vector.load %arg4[%c0_18, %c0_19] : memref<1024x128xbf16, #tpu.memory_space<vmem>>, vector<1024x128xbf16>
    %cst_20 = arith.constant dense<0.000000e+00> : vector<8x128xf32>
    %84 = tpu.matmul %82, %83, %cst_20 {dimension_numbers = #tpu.dot_dimension_numbers<[1], [0], [0], [1], [0, 0, 1, 1], [], []>} : vector<8x1024xbf16>, vector<1024x128xbf16>, vector<8x128xf32> -> vector<8x128xf32>
    %c0_21 = arith.constant 0 : index
    %c0_22 = arith.constant 0 : index
    %85 = vector.load %arg5[%c0_21, %c0_22] : memref<1x128xf32, #tpu.memory_space<vmem>>, vector<1x128xf32>
    %86 = vector.broadcast %85 : vector<1x128xf32> to vector<8x128xf32>
    %87 = arith.addf %84, %86 : vector<8x128xf32>
    %c0_23 = arith.constant 0 : index
    %c0_24 = arith.constant 0 : index
    %88 = vector.load %arg6[%c0_23, %c0_24] : memref<8x128xf32, #tpu.memory_space<vmem>>, vector<8x128xf32>
    tpu.vector_store %arg6[%c0_23, %c0_24], %87 {strides = array<i32>} : memref<8x128xf32, #tpu.memory_space<vmem>>, vector<8x128xf32>,
    return
  }
  func.func @transform_0(%arg0: i32) -> (i32, i32) {
    %c0_i32 = arith.constant 0 : i32
    %c0_i32_0 = arith.constant 0 : i32
    return %arg0, %c0_i32 : i32, i32
  }
  func.func @transform_1(%arg0: i32) -> (i32, i32) {
    %c0_i32 = arith.constant 0 : i32
    %c0_i32_0 = arith.constant 0 : i32
    %c0_i32_1 = arith.constant 0 : i32
    return %c0_i32, %c0_i32_0 : i32, i32
  }
  func.func @transform_2(%arg0: i32) -> (i32, i32) {
    %c0_i32 = arith.constant 0 : i32
    %c0_i32_0 = arith.constant 0 : i32
    %c0_i32_1 = arith.constant 0 : i32
    return %c0_i32, %c0_i32_0 : i32, i32
  }
  func.func @transform_3(%arg0: i32) -> (i32, i32) {
    %c0_i32 = arith.constant 0 : i32
    %c0_i32_0 = arith.constant 0 : i32
    %c0_i32_1 = arith.constant 0 : i32
    return %c0_i32, %c0_i32_0 : i32, i32
  }
  func.func @transform_4(%arg0: i32) -> (i32, i32) {
    %c0_i32 = arith.constant 0 : i32
    %c0_i32_0 = arith.constant 0 : i32
    %c0_i32_1 = arith.constant 0 : i32
    return %c0_i32, %c0_i32_0 : i32, i32
  }
  func.func @transform_5(%arg0: i32) -> (i32, i32) {
    %c0_i32 = arith.constant 0 : i32
    %c0_i32_0 = arith.constant 0 : i32
    return %arg0, %c0_i32 : i32, i32
  }
}

</mosaic_0001>

<bundles_post_ra>
// kernel: tpu_custom_call.1
= control target key start
LH: loop header
LB: loop body
LE: loop exit
PB: predicated region body
PF: predicated region fallthrough
CT: control target
= control target key end

     0   :  { %10 = vsyncpa [#allocation3], 0  ;;  %s1662_s0 = inlined_call_operand.hbm [shape: f32[8,32], index: 0, kind: input, shape index: {}]   ;;  %s1663_s1 = inlined_call_operand.hbm [shape: bf16[32,1024], index: 1, kind: input, shape index: {}]   ;;  %s1664_s2 = inlined_call_operand.hbm [shape: f32[1,1024], index: 2, kind: input, shape index: {}]   ;;  %s1665_s3 = inlined_call_operand.hbm [shape: bf16[1024,128], index: 3, kind: input, shape index: {}]   ;;  %s1666_s4 = inlined_call_operand.vmem [shape: f32[1,128], index: 4, kind: input, shape index: {}]   ;;  %s1667_s5 = inlined_call_operand.hbm [shape: f32[8,128], index: 5, kind: output, shape index: {}]  }
   0x1   :  { %11 = vsyncpa [#allocation6], 0 }
   0x2   :  { %12 = vsyncpa [#allocation9], 0 }
   0x3   :  { %13 = vsyncpa [#allocation4], 0  ;;  %s1537_s18 = smov [#allocation5]   ;;  %s1419_s22 = scalar_lea.hbm %s1663_s1, 2048 }
   0x4   :  { %s29_s19 = sshll.u32 %s1537_s18, 4  ;;  %p1420_p0 = scmp.ne.s32.totalorder %s1663_s1, %s1419_s22  ;;  %s30_s19 = int_to_ptr.vmem [resolvable:$true] %s29_s19 }
   0x5   :  { %p1423_p1 = scmp.lt.u32.totalorder %s1419_s22, %s1663_s1 }
   0x7   :  { %p1425_p2 = pnand %p1423_p1, %p1420_p0 }
   0x9   :  { %1428 = shalt.err (!%p1425_p2)
}
   0xa   :  { %s1429_s27 = scalar_lea.vmem %s30_s19, 2048  ;;  %p1434_p4 = scmp.lt.s32.totalorder %s30_s19, %s30_s19 }
   0xb   :  { %p1430_p3 = scmp.ne.s32.totalorder %s30_s19, %s1429_s27  ;;  %p1435_p5 = scmp.lt.s32.totalorder %s1429_s27, %s1429_s27 }
   0xd   :  { %p1436_p6 = por %p1435_p5, %p1434_p4 }
   0xf   :  { %p1437_p7 = pnand %p1436_p6, %p1430_p3 }
  0x11   :  { %1440 = shalt.err (!%p1437_p7)
}
  0x12   :  { %s1538_s28 = smov 512   ;;  %s1539_s29 = smov 32  }
  0x13   :  { %35 = dma.hbm_to_vmem [thread:$0]  %s1663_s1, 2048, %s30_s19, [#allocation6], %s1538_s28, %s1538_s28, %s1539_s29  }
  0x14   :  { %s1540_s7 = smov [#allocation2]   ;;  %s1541_s9 = smov [#allocation7]  }
  0x15   :  { %s20_s8 = sshll.u32 %s1540_s7, 4  ;;  %s42_s10 = sshll.u32 %s1541_s9, 4  ;;  %s21_s8 = int_to_ptr.vmem [resolvable:$true] %s20_s8  ;;  %s43_s10 = int_to_ptr.vmem [resolvable:$true] %s42_s10 }
  0x16   :  { %s1441_s13 = scalar_lea.hbm %s1662_s0, 128 }
  0x17   :  { %p1442_p8 = scmp.ne.s32.totalorder %s1662_s0, %s1441_s13  ;;  %p1445_p9 = scmp.lt.u32.totalorder %s1441_s13, %s1662_s0 }
  0x19   :  { %p1447_p10 = pnand %p1445_p9, %p1442_p8 }
  0x1b   :  { %1450 = shalt.err (!%p1447_p10)
}
  0x1c   :  { %s1451_s1 = scalar_lea.vmem %s21_s8, 128  ;;  %p1456_p12 = scmp.lt.s32.totalorder %s21_s8, %s21_s8 }
  0x1d   :  { %p1452_p11 = scmp.ne.s32.totalorder %s21_s8, %s1451_s1  ;;  %p1457_p13 = scmp.lt.s32.totalorder %s1451_s1, %s1451_s1 }
  0x1f   :  { %p1458_p0 = por %p1457_p13, %p1456_p12 }
  0x21   :  { %p1459_p1 = pnand %p1458_p0, %p1452_p11 }
  0x23   :  { %1462 = shalt.err (!%p1459_p1)
}
  0x24   :  { %23 = dma.hbm_to_vmem [thread:$0]  %s1662_s0, 128, %s21_s8, [#allocation3]  }
  0x25   :  { %s1463_s22 = scalar_lea.hbm %s1664_s2, 128 }
  0x26   :  { %p1464_p2 = scmp.ne.s32.totalorder %s1664_s2, %s1463_s22  ;;  %p1467_p3 = scmp.lt.u32.totalorder %s1463_s22, %s1664_s2 }
  0x28   :  { %p1469_p4 = pnand %p1467_p3, %p1464_p2 }
  0x2a   :  { %1472 = shalt.err (!%p1469_p4)
}
  0x2b   :  { %s1473_s27 = scalar_lea.vmem %s43_s10, 128  ;;  %p1478_p6 = scmp.lt.s32.totalorder %s43_s10, %s43_s10 }
  0x2c   :  { %p1474_p5 = scmp.ne.s32.totalorder %s43_s10, %s1473_s27  ;;  %p1479_p7 = scmp.lt.s32.totalorder %s1473_s27, %s1473_s27 }
  0x2e   :  { %p1480_p8 = por %p1479_p7, %p1478_p6 }
  0x30   :  { %p1481_p9 = pnand %p1480_p8, %p1474_p5 }
  0x32   :  { %1484 = shalt.err (!%p1481_p9)
}
  0x33   :  { %45 = dma.hbm_to_vmem [thread:$0]  %s1664_s2, 128, %s43_s10, [#allocation6]  }
  0x34   :  { %s1542_s29 = smov [#allocation8]   ;;  %s1485_s8 = scalar_lea.hbm %s1665_s3, 8192 }
  0x35   :  { %s51_s30 = sshll.u32 %s1542_s29, 4  ;;  %p1486_p10 = scmp.ne.s32.totalorder %s1665_s3, %s1485_s8  ;;  %s52_s30 = int_to_ptr.vmem [resolvable:$true] %s51_s30 }
  0x36   :  { %p1489_p11 = scmp.lt.u32.totalorder %s1485_s8, %s1665_s3 }
  0x38   :  { %p1491_p12 = pnand %p1489_p11, %p1486_p10 }
  0x3a   :  { %1494 = shalt.err (!%p1491_p12)
}
  0x3b   :  { %s1495_s14 = scalar_lea.vmem %s52_s30, 8192  ;;  %p1500_p0 = scmp.lt.s32.totalorder %s52_s30, %s52_s30 }
  0x3c   :  { %p1496_p13 = scmp.ne.s32.totalorder %s52_s30, %s1495_s14  ;;  %p1501_p1 = scmp.lt.s32.totalorder %s1495_s14, %s1495_s14 }
  0x3e   :  { %p1502_p2 = por %p1501_p1, %p1500_p0 }
  0x40   :  { %p1503_p3 = pnand %p1502_p2, %p1496_p13 }
  0x42   :  { %1506 = shalt.err (!%p1503_p3)
}
  0x43   :  { %s1543_s2 = smov 64   ;;  %s1544_s10 = smov 4  }
  0x44   :  { %57 = dma.hbm_to_vmem [thread:$0]  %s1665_s3, 8192, %s52_s30, [#allocation9], %s1543_s2, %s1543_s2, %s1544_s10  }
  0x45   :  { %1529 = dma.done.wait [#allocation3], 128  }
  0x46   :  { %1530 = vsyncadd [#allocation3], 4294967168 }
  0x47   :  { %1531 = dma.done.wait [#allocation6], 2176  }
  0x48   :  { %1532 = vsyncadd [#allocation6], 4294965120 }
  0x49   :  { %1533 = dma.done.wait [#allocation9], 8192  }
  0x4a   :  { %1534 = vsyncadd [#allocation9], 4294959104  ;;  %v1545_v0 = vmov 7   ;;  %v1546_v1 = vmov 5   ;;  %v1631_v2 = vld [vmem:[#allocation2] sm:$0xff]  ;;  %v1547_v14 = vmov 8   ;;  %v74_v43 = vlaneseq }
  0x4b   :  { %1335 = vset.pattern.permute.xlu1 %v1545_v0  ;;  %1333 = vset.pattern.permute.xlu0 %v1546_v1  ;;  %v1315_v3 = vtrunc.f32 %v1631_v2  ;;  %v1548_v15 = vmov 6   ;;  %v121_v17 = vld [vmem:[#allocation5] sm:$0xff]  ;;  %v122_v19 = vld [vmem:[#allocation5 + $0x8] sm:$0xff]  ;;  %v1549_v25 = vmov 9   ;;  %v123_v34 = vld [vmem:[#allocation5 + $0x10] sm:$0xff]  ;;  %v1550_v39 = vmov 0  }
  0x4c   :  { %v125_v18 = vld [vmem:[#allocation5 + $0x20] sm:$0xff]  ;;  %v126_v21 = vld [vmem:[#allocation5 + $0x28] sm:$0xff]  ;;  %v127_v35 = vld [vmem:[#allocation5 + $0x30] sm:$0xff]  ;;  %295 = vmatprep.mubr.bf16.mxu0 %v1550_v39  ;;  %336 = vmatprep.mubr.bf16.mxu1 %v1550_v39  ;;  %v75_v46 = vand.u32 127, %v74_v43  ;;  %v1551_v52 = vmov 0.0   ;;  %vm259_vm14 = vcmask 261120  }
  0x4d   :  { %v1316_v4 = vcvt.f32.s32 %v1315_v3  ;;  %v1143_v20 = vcombine.high %v121_v17, %v125_v18  ;;  %v1145_v22 = vcombine.high %v122_v19, %v126_v21  ;;  %v1142_v23 = vcombine.low %v121_v17, %v125_v18  ;;  %v129_v26 = vld [vmem:[#allocation5 + $0x40] sm:$0xff]  ;;  %v130_v28 = vld [vmem:[#allocation5 + $0x48] sm:$0xff]  ;;  %v124_v36 = vld [vmem:[#allocation5 + $0x18] sm:$0xff] }
  0x4e   :  { %v1144_v24 = vcombine.low %v122_v19, %v126_v21  ;;  %v133_v27 = vld [vmem:[#allocation5 + $0x60] sm:$0xff]  ;;  %v134_v30 = vld [vmem:[#allocation5 + $0x68] sm:$0xff]  ;;  %v1147_v37 = vcombine.high %v123_v34, %v127_v35  ;;  %v128_v38 = vld [vmem:[#allocation5 + $0x38] sm:$0xff]  ;;  %v1146_v40 = vcombine.low %v123_v34, %v127_v35  ;;  %vm115_vm9 = vcmp.lt.s32.totalorder %v75_v46, 5 }
  0x4f   :  { %v1140_v5 = vadd.s32 4294967295, %v1316_v4  ;;  %263 = vmatprep.subr.bf16.mxu0 %v1143_v20  ;;  %304 = vmatprep.subr.bf16.mxu1 %v1145_v22  ;;  %v1151_v29 = vcombine.high %v129_v26, %v133_v27  ;;  %v1153_v31 = vcombine.high %v130_v28, %v134_v30  ;;  %v1150_v32 = vcombine.low %v129_v26, %v133_v27  ;;  %v131_v51 = vld [vmem:[#allocation5 + $0x50] sm:$0xff]  ;;  %v132_v55 = vld [vmem:[#allocation5 + $0x58] sm:$0xff]  ;;  %v1339_v63 = vld [vmem:[#allocation8 + $0x40] sm:$0xff]  }
  0x50   :  { %264 = vmatpush1.bf16.msra.mxu0 %v1142_v23  ;;  %305 = vmatpush1.bf16.msra.mxu1 %v1144_v24  ;;  %v1152_v33 = vcombine.low %v130_v28, %v134_v30  ;;  %v1148_v41 = vcombine.low %v124_v36, %v128_v38  ;;  %v1149_v42 = vcombine.high %v124_v36, %v128_v38  ;;  %v116_v50 = vsel %vm115_vm9, %v1631_v2, 0.0  ;;  %v135_v54 = vld [vmem:[#allocation5 + $0x70] sm:$0xff]  ;;  %v136_v56 = vld [vmem:[#allocation5 + $0x78] sm:$0xff]  ;;  %v1340_v0 = vld [vmem:[#allocation8 + $0xc0] sm:$0xff]  }
  0x51   :  { %vm78_vm0 = vcmp.gt.s32.totalorder %v1140_v5, 0  ;;  %265 = vmatprep.subr.bf16.mxu0 %v1151_v29  ;;  %306 = vmatprep.subr.bf16.mxu1 %v1153_v31  ;;  %v1155_v59 = vcombine.high %v131_v51, %v135_v54  ;;  %v1157_v60 = vcombine.high %v132_v55, %v136_v56  ;;  %v1154_v61 = vcombine.low %v131_v51, %v135_v54  ;;  %v1341_v1 = vld [vmem:[#allocation8] sm:$0xff]   ;;  %v1343_v3 = vld [vmem:[#allocation8 + $0x48] sm:$0xff]   ;;  %v1363_v23 = vld [vmem:[#allocation8 + $0x70] sm:$0xff]  }
  0x52   :  { %v79_v6 = vsel %vm78_vm0, %v1140_v5, 0  ;;  %v1156_v62 = vcombine.low %v132_v55, %v136_v56  ;;  %v1342_v2 = vld [vmem:[#allocation8 + $0x80] sm:$0xff]   ;;  %v1344_v4 = vld [vmem:[#allocation8 + $0xc8] sm:$0xff]   ;;  %v1364_v24 = vld [vmem:[#allocation8 + $0xf0] sm:$0xff]  }
  0x53   :  { %vm95_vm1 = vcmp.lt.s32.totalorder %v79_v6, 6  ;;  %vm80_vm2 = vcmp.lt.s32.totalorder %v79_v6, 10  ;;  %vm87_vm3 = vcmp.lt.s32.totalorder %v79_v6, 1  ;;  %v1345_v5 = vld [vmem:[#allocation8 + $0x8] sm:$0xff]   ;;  %v1357_v17 = vld [vmem:[#allocation8 + $0x20] sm:$0xff]   ;;  %v1366_v26 = vld [vmem:[#allocation8 + $0xb0] sm:$0xff]  }
  0x54   :  { %v96_v7 = vsel %vm95_vm1, %v79_v6, 6  ;;  %v81_v8 = vsel %vm80_vm2, %v79_v6, 10  ;;  %v88_v9 = vsel %vm87_vm3, %v79_v6, 1  ;;  %266 = vmatpush1.bf16.msra.mxu0 %v1150_v32  ;;  %307 = vmatpush1.bf16.msra.mxu1 %v1152_v33  ;;  %v1346_v6 = vld [vmem:[#allocation8 + $0x88] sm:$0xff]   ;;  %v1358_v18 = vld [vmem:[#allocation8 + $0xa0] sm:$0xff]   ;;  %v1367_v27 = vld [vmem:[#allocation8 + $0x78] sm:$0xff]  }
  0x55   :  { %v97_v10 = vadd.s32 18, %v96_v7  ;;  %v82_v11 = vadd.s32 5, %v81_v8  ;;  %v103_v12 = vadd.s32 25, %v88_v9  ;;  %v89_v13 = vadd.s32 16, %v88_v9  ;;  %345 = vmatprep.subr.bf16.mxu0 %v1147_v37  ;;  %386 = vmatprep.subr.bf16.mxu1 %v1149_v42  ;;  %v1347_v7 = vld [vmem:[#allocation8 + $0x50] sm:$0xff]   ;;  %v1359_v19 = vld [vmem:[#allocation8 + $0x68] sm:$0xff]  }
  0x56   :  { %v109_v16 = vadd.s32 27, %v88_v9  ;;  %v1348_v8 = vld [vmem:[#allocation8 + $0xd0] sm:$0xff]   ;;  %v1360_v20 = vld [vmem:[#allocation8 + $0xe8] sm:$0xff]   ;;  %v1368_v28 = vld [vmem:[#allocation8 + $0xf8] sm:$0xff]   ;;  %v140_v33 = vshrl.u32 %v74_v43, 7 }
  0x57   :  { %99 = vperm.xlu1 %1335, %v97_v10   ;;  %84 = vperm.xlu0 %1333, %v82_v11   ;;  %v1349_v9 = vld [vmem:[#allocation8 + $0x10] sm:$0xff]   ;;  %v1351_v11 = vld [vmem:[#allocation8 + $0x58] sm:$0xff]   ;;  %v1361_v21 = vld [vmem:[#allocation8 + $0x28] sm:$0xff]  }
  0x58   :  { %v1350_v10 = vld [vmem:[#allocation8 + $0x90] sm:$0xff]   ;;  %v1362_v22 = vld [vmem:[#allocation8 + $0xa8] sm:$0xff]   ;;  %v1369_v29 = vld [vmem:[#allocation8 + $0x38] sm:$0xff]   ;;  %v141_v34 = vsub.s32 0, %v140_v33  ;;  %v149_v35 = vsub.s32 2, %v140_v33  ;;  %v145_v37 = vsub.s32 1, %v140_v33 }
  0x59   :  { %v1370_v30 = vld [vmem:[#allocation8 + $0xb8] sm:$0xff]   ;;  %v1371_v31 = vld [vmem:[#allocation8 + $0x140] sm:$0xff]   ;;  %v153_v38 = vsub.s32 3, %v140_v33  ;;  %v165_v51 = vsub.s32 6, %v140_v33  ;;  %v161_v55 = vsub.s32 5, %v140_v33  ;;  %v169_v56 = vsub.s32 7, %v140_v33 }
  0x5a   :  { %v1372_v32 = vld [vmem:[#allocation8 + $0x1c0] sm:$0xff]   ;;  %v137_v36 = vld [vmem:[#allocation7] sm:$0xff] }
  0x5b   :  { %1336 = vset.pattern.permute.xlu1 %v1547_v14  ;;  %1334 = vset.pattern.permute.xlu0 %v1548_v15  ;;  %v1354_v14 = vld [vmem:[#allocation8 + $0x98] sm:$0xff]   ;;  %v1355_v15 = vld [vmem:[#allocation8 + $0x60] sm:$0xff]   ;;  %v154_v42 = vrot.slane %v137_v36, %v153_v38 }
  0x5c   :  { %105 = vperm.xlu1 %1336, %v103_v12   ;;  %91 = vperm.xlu0 %1334, %v89_v13   ;;  %v1352_v12 = vld [vmem:[#allocation8 + $0xd8] sm:$0xff]   ;;  %v1388_v38 = vld [vmem:[#allocation8 + $0x1e0] sm:$0xff]  }
  0x5d   :  { %v1353_v13 = vld [vmem:[#allocation8 + $0x18] sm:$0xff]  }
  0x60   :  { %1337 = vset.pattern.permute.xlu1 %v1549_v25  ;;  %1338 = vset.pattern.permute.xlu0 %v1549_v25  ;;  %v1365_v25 = vld [vmem:[#allocation8 + $0x30] sm:$0xff]  }
  0x61   :  { %111 = vperm.xlu1 %1337, %v109_v16   ;;  %v1356_v16 = vld [vmem:[#allocation8 + $0xe0] sm:$0xff]  }
  0xd6   :  { %v100_v44 = vpop.permute.xlu1 %99  ;;  %v85_v45 = vpop.permute.xlu0 %84 }
  0xd7   :  { %vm86_vm4 = vcmp.eq.s32.totalorder %v75_v46, %v85_v45  ;;  %vm101_vm6 = vcmp.eq.s32.totalorder %v75_v46, %v100_v44 }
  0xdb   :  { %v106_v47 = vpop.permute.xlu1 %105  ;;  %v92_v48 = vpop.permute.xlu0 %91 }
  0xdc   :  { %vm93_vm5 = vcmp.eq.s32.totalorder %v75_v46, %v92_v48  ;;  %vm107_vm10 = vcmp.eq.s32.totalorder %v75_v46, %v106_v47 }
  0xdd   :  { %vm94_vm7 = vmor %vm86_vm4, %vm93_vm5 }
  0xde   :  { %vm102_vm8 = vmor %vm94_vm7, %vm101_vm6 }
  0xdf   :  { %vm108_vm11 = vmor %vm102_vm8, %vm107_vm10 }
  0xe0   :  { %v112_v49 = vpop.permute.xlu1 %111 }
  0xe1   :  { %vm113_vm12 = vcmp.eq.s32.totalorder %v75_v46, %v112_v49 }
  0xe2   :  { %vm114_vm13 = vmor %vm108_vm11, %vm113_vm12 }
  0xe3   :  { %v1141_v53 = vsel %vm114_vm13, 1.0, %v1551_v52 }
  0xe4   :  { %v119_v57 = vadd.f32 %v1141_v53, %v116_v50  ;;  %v157_v50 = vsub.s32 4, %v140_v33  ;;  %v1383_v33 = vld [vmem:[#allocation8 + $0x158] sm:$0xff]  }
  0xe6   :  { %v120_v58 = vpack.c.bf16 %v119_v57, %v119_v57 }
  0xe8   :  { %1158 = vmatmul.mubr.msk.bf16.vlgmr.msra.gmra.mrb[0].mxu0 %vm259_vm14, %v120_v58  ;;  %1159 = vmatmul.mubr.msk.bf16.vlgmr.msra.gmra.mrb[0].mxu1 %vm259_vm14, %v120_v58 }
  0xe9   :  { %346 = vmatpush1.bf16.msra.mxu0 %v1146_v40  ;;  %387 = vmatpush1.bf16.msra.mxu1 %v1148_v41  ;;  %v150_v40 = vrot.slane %v137_v36, %v149_v35  ;;  %v146_v41 = vrot.slane %v137_v36, %v145_v37  ;;  %v1385_v35 = vld [vmem:[#allocation8 + $0x118] sm:$0xff]   ;;  %v1387_v37 = vld [vmem:[#allocation8 + $0x160] sm:$0xff]  }
  0xea   :  { %347 = vmatprep.subr.bf16.mxu0 %v1155_v59  ;;  %388 = vmatprep.subr.bf16.mxu1 %v1157_v60  ;;  %v158_v59 = vrot.slane %v137_v36, %v157_v50  ;;  %v166_v60 = vrot.slane %v137_v36, %v165_v51  ;;  %v1399_v50 = vld [vmem:[#allocation8 + $0x178] sm:$0xff]  }
  0xeb   :  { %377 = vmatprep.mubr.bf16.mxu0 %v1550_v39  ;;  %418 = vmatprep.mubr.bf16.mxu1 %v1550_v39  ;;  %v142_v39 = vrot.slane %v137_v36, %v141_v34  ;;  %v1384_v34 = vld [vmem:[#allocation8 + $0x1d8] sm:$0xff]  }
  0xec   :  { %v1400_v51 = vld [vmem:[#allocation8 + $0x1f8] sm:$0xff]  }
  0xed   :  { %348 = vmatpush1.bf16.msra.mxu0 %v1154_v61  ;;  %389 = vmatpush1.bf16.msra.mxu1 %v1156_v62  ;;  %v162_v61 = vrot.slane %v137_v36, %v161_v55  ;;  %v170_v62 = vrot.slane %v137_v36, %v169_v56  ;;  %v1386_v36 = vld [vmem:[#allocation8 + $0x198] sm:$0xff]  }
  0xee   :  { %1227 = vmatprep.subr.bf16.mxu0 %v1339_v63  ;;  %1249 = vmatprep.subr.bf16.mxu1 %v1340_v0 }
  0xf0   :  { %1160 = vmatmul.mubr.msk.bf16.vlgmr.msra.gmra.mrb[4].mxu0 %vm259_vm14, %v120_v58  ;;  %1161 = vmatmul.mubr.msk.bf16.vlgmr.msra.gmra.mrb[4].mxu1 %vm259_vm14, %v120_v58 }
  0xf1   :  { %1228 = vmatpush3.bf16.msra.mxu0 %v1341_v1  ;;  %1250 = vmatpush3.bf16.msra.mxu1 %v1342_v2 }
  0xf2   :  { %1229 = vmatprep.subr.bf16.mxu0 %v1343_v3  ;;  %1251 = vmatprep.subr.bf16.mxu1 %v1344_v4 }
  0xf5   :  { %1230 = vmatpush3.bf16.msra.mxu0 %v1345_v5  ;;  %1252 = vmatpush3.bf16.msra.mxu1 %v1346_v6 }
  0xf6   :  { %1231 = vmatprep.subr.bf16.mxu0 %v1347_v7  ;;  %1253 = vmatprep.subr.bf16.mxu1 %v1348_v8 }
  0xf9   :  { %1232 = vmatpush3.bf16.msra.mxu0 %v1349_v9  ;;  %1254 = vmatpush3.bf16.msra.mxu1 %v1350_v10 }
  0xfa   :  { %1233 = vmatprep.subr.bf16.mxu0 %v1351_v11  ;;  %1255 = vmatprep.subr.bf16.mxu1 %v1352_v12 }
  0xfd   :  { %1234 = vmatpush3.bf16.msra.mxu0 %v1353_v13  ;;  %1256 = vmatpush3.bf16.msra.mxu1 %v1354_v14 }
  0xfe   :  { %1235 = vmatprep.subr.bf16.mxu0 %v1355_v15  ;;  %1257 = vmatprep.subr.bf16.mxu1 %v1356_v16  ;;  %v1373_v16 = vld [vmem:[#allocation8 + $0x100] sm:$0xff]  }
 0x101   :  { %1236 = vmatpush3.bf16.msra.mxu0 %v1357_v17  ;;  %1258 = vmatpush3.bf16.msra.mxu1 %v1358_v18 }
 0x102   :  { %1237 = vmatprep.subr.bf16.mxu0 %v1359_v19  ;;  %1259 = vmatprep.subr.bf16.mxu1 %v1360_v20  ;;  %v1374_v19 = vld [vmem:[#allocation8 + $0x180] sm:$0xff]   ;;  %v1375_v20 = vld [vmem:[#allocation8 + $0x148] sm:$0xff]  }
 0x105   :  { %1238 = vmatpush3.bf16.msra.mxu0 %v1361_v21  ;;  %1260 = vmatpush3.bf16.msra.mxu1 %v1362_v22  ;;  %v1376_v22 = vld [vmem:[#allocation8 + $0x1c8] sm:$0xff]  }
 0x106   :  { %1239 = vmatprep.subr.bf16.mxu0 %v1363_v23  ;;  %1261 = vmatprep.subr.bf16.mxu1 %v1364_v24  ;;  %v1377_v23 = vld [vmem:[#allocation8 + $0x108] sm:$0xff]  }
 0x107   :  { %v1378_v24 = vld [vmem:[#allocation8 + $0x188] sm:$0xff]  }
 0x109   :  { %1240 = vmatpush3.bf16.msra.mxu0 %v1365_v25  ;;  %1262 = vmatpush3.bf16.msra.mxu1 %v1366_v26  ;;  %v1379_v25 = vld [vmem:[#allocation8 + $0x150] sm:$0xff]  }
 0x10a   :  { %1241 = vmatprep.subr.bf16.mxu0 %v1367_v27  ;;  %1263 = vmatprep.subr.bf16.mxu1 %v1368_v28  ;;  %v1380_v26 = vld [vmem:[#allocation8 + $0x1d0] sm:$0xff]  }
 0x10d   :  { %1242 = vmatpush3.bf16.msra.mxu0 %v1369_v29  ;;  %1264 = vmatpush3.bf16.msra.mxu1 %v1370_v30  ;;  %v1381_v30 = vld [vmem:[#allocation8 + $0x110] sm:$0xff]  }
 0x10e   :  { %1271 = vmatprep.subr.bf16.mxu0 %v1371_v31  ;;  %1293 = vmatprep.subr.bf16.mxu1 %v1372_v32  ;;  %v1382_v32 = vld [vmem:[#allocation8 + $0x190] sm:$0xff]  }
 0x1bb   :  { %v297_v44 = vpop.f32.mrb[0].mxu0  ;;  %v338_v45 = vpop.f32.mrb[0].mxu1 }
 0x1bc   :  { %v298_v46 = vadd.f32 %v297_v44, %v142_v39  ;;  %v339_v47 = vadd.f32 %v338_v45, %v150_v40  ;;  %v299_v48 = vpop.f32.mrb[1].mxu0  ;;  %v340_v49 = vpop.f32.mrb[1].mxu1  ;;  %v1389_v39 = vld [vmem:[#allocation8 + $0x120] sm:$0xff]   ;;  %v1393_v44 = vld [vmem:[#allocation8 + $0x128] sm:$0xff]  }
 0x1bd   :  { %v300_v52 = vadd.f32 %v299_v48, %v146_v41  ;;  %v341_v53 = vadd.f32 %v340_v49, %v154_v42  ;;  %v301_v43 = vpop.f32.mrb[2].mxu0  ;;  %v342_v54 = vpop.f32.mrb[2].mxu1  ;;  %v1390_v40 = vld [vmem:[#allocation8 + $0x1a0] sm:$0xff]   ;;  %v1391_v41 = vld [vmem:[#allocation8 + $0x168] sm:$0xff]   ;;  %v1397_v48 = vld [vmem:[#allocation8 + $0x130] sm:$0xff]  }
 0x1be   :  { %1403 = vtanh.f32 %v298_v46  ;;  %v302_v57 = vpop.f32.mrb[3].mxu0  ;;  %v343_v58 = vpop.f32.mrb[3].mxu1  ;;  %v1392_v42 = vld [vmem:[#allocation8 + $0x1e8] sm:$0xff]   ;;  %v1395_v46 = vld [vmem:[#allocation8 + $0x170] sm:$0xff]  }
 0x1bf   :  { %1405 = vtanh.f32 %v339_v47  ;;  %v1394_v45 = vld [vmem:[#allocation8 + $0x1a8] sm:$0xff]   ;;  %v1396_v47 = vld [vmem:[#allocation8 + $0x1f0] sm:$0xff]  }
 0x1c0   :  { %1407 = vtanh.f32 %v300_v52  ;;  %v1398_v49 = vld [vmem:[#allocation8 + $0x1b0] sm:$0xff]   ;;  %v1401_v52 = vld [vmem:[#allocation8 + $0x138] sm:$0xff]  }
 0x1c1   :  { %1409 = vtanh.f32 %v341_v53  ;;  %v1402_v53 = vld [vmem:[#allocation8 + $0x1b8] sm:$0xff]  }
 0x1c3   :  { %v379_v63 = vpop.f32.mrb[4].mxu0  ;;  %v420_v0 = vpop.f32.mrb[4].mxu1 }
 0x1c4   :  { %v1641_v1 = vadd.f32 %v379_v63, %v158_v59  ;;  %v1643_v2 = vadd.f32 %v420_v0, %v166_v60  ;;  %v381_v3 = vpop.f32.mrb[5].mxu0  ;;  %v422_v4 = vpop.f32.mrb[5].mxu1  ;;  %v1162_v59 = vld [vmem:[%s1666_s4] ss:$0 sm:$0xff]  ;;  %s1552_s4 = smov [#allocation10]  }
 0x1c5   :  { %v382_v5 = vadd.f32 %v381_v3, %v162_v61  ;;  %v423_v6 = vadd.f32 %v422_v4, %v170_v62  ;;  %v383_v7 = vpop.f32.mrb[6].mxu0  ;;  %v424_v8 = vpop.f32.mrb[6].mxu1  ;;  %s1129_s1 = sshll.u32 %s1552_s4, 4  ;;  %s1130_s1 = int_to_ptr.vmem [resolvable:$true] %s1129_s1 }
 0x1c6   :  { %v384_v9 = vpop.f32.mrb[7].mxu0  ;;  %v425_v10 = vpop.f32.mrb[7].mxu1  ;;  %s1507_s18 = scalar_lea.vmem %s1130_s1, 128  ;;  %p1512_p5 = scmp.lt.s32.totalorder %s1130_s1, %s1130_s1 }
 0x1c7   :  { %1411 = vtanh.f32 %v382_v5  ;;  %p1508_p4 = scmp.ne.s32.totalorder %s1130_s1, %s1507_s18  ;;  %p1513_p6 = scmp.lt.s32.totalorder %s1507_s18, %s1507_s18 }
 0x1c8   :  { %v1404_v11 = vpop.eup %1403  ;;  %1413 = vtanh.f32 %v423_v6 }
 0x1c9   :  { %v1406_v12 = vpop.eup %1405  ;;  %v435_v17 = vpack.c.bf16 %v1404_v11, %v1404_v11  ;;  %1415 = vtanh.f32 %v1641_v1  ;;  %p1514_p7 = por %p1513_p6, %p1512_p5 }
 0x1ca   :  { %v1408_v13 = vpop.eup %1407  ;;  %v437_v21 = vpack.c.bf16 %v1406_v12, %v1406_v12  ;;  %1417 = vtanh.f32 %v1643_v2 }
 0x1cb   :  { %v1410_v14 = vpop.eup %1409  ;;  %v436_v15 = vpack.c.bf16 %v1408_v13, %v1408_v13  ;;  %p1515_p8 = pnand %p1514_p7, %p1508_p4 }
 0x1cc   :  { %v438_v18 = vpack.c.bf16 %v1410_v14, %v1410_v14 }
 0x1cd   :  { %994 = vmatprep.mubr.bf16.mxu0 %v436_v15 }
 0x1ce   :  { %1034 = vmatprep.mubr.bf16.mxu1 %v438_v18  ;;  %995 = vmatmul.mubr.bf16.vlgmr.msra.gmra.mrb[8].mxu0 %v435_v17 }
 0x1cf   :  { %1035 = vmatmul.mubr.bf16.vlgmr.msra.gmra.mrb[8].mxu1 %v437_v21  ;;  %1272 = vmatpush3.bf16.msra.mxu0 %v1373_v16 }
 0x1d0   :  { %1294 = vmatpush3.bf16.msra.mxu1 %v1374_v19  ;;  %1273 = vmatprep.subr.bf16.mxu0 %v1375_v20 }
 0x1d1   :  { %1295 = vmatprep.subr.bf16.mxu1 %v1376_v22  ;;  %v1412_v27 = vpop.eup %1411 }
 0x1d2   :  { %v1414_v28 = vpop.eup %1413  ;;  %v440_v29 = vpack.c.bf16 %v1412_v27, %v1412_v27 }
 0x1d3   :  { %1274 = vmatpush3.bf16.msra.mxu0 %v1377_v23  ;;  %v442_v31 = vpack.c.bf16 %v1414_v28, %v1414_v28  ;;  %v1416_v43 = vpop.eup %1415 }
 0x1d4   :  { %1296 = vmatpush3.bf16.msra.mxu1 %v1378_v24  ;;  %1275 = vmatprep.subr.bf16.mxu0 %v1379_v25  ;;  %v1418_v54 = vpop.eup %1417  ;;  %v439_v55 = vpack.c.bf16 %v1416_v43, %v1416_v43 }
 0x1d5   :  { %1074 = vmatprep.mubr.bf16.mxu0 %v440_v29  ;;  %1297 = vmatprep.subr.bf16.mxu1 %v1380_v26  ;;  %v441_v56 = vpack.c.bf16 %v1418_v54, %v1418_v54 }
 0x1d6   :  { %1114 = vmatprep.mubr.bf16.mxu1 %v442_v31 }
 0x1d7   :  { %1276 = vmatpush3.bf16.msra.mxu0 %v1381_v30 }
 0x1d8   :  { %1298 = vmatpush3.bf16.msra.mxu1 %v1382_v32  ;;  %1277 = vmatprep.subr.bf16.mxu0 %v1383_v33 }
 0x1d9   :  { %1299 = vmatprep.subr.bf16.mxu1 %v1384_v34 }
 0x1db   :  { %1278 = vmatpush3.bf16.msra.mxu0 %v1385_v35 }
 0x1dc   :  { %1300 = vmatpush3.bf16.msra.mxu1 %v1386_v36  ;;  %1279 = vmatprep.subr.bf16.mxu0 %v1387_v37 }
 0x1dd   :  { %1301 = vmatprep.subr.bf16.mxu1 %v1388_v38 }
 0x1df   :  { %1280 = vmatpush3.bf16.msra.mxu0 %v1389_v39 }
 0x1e0   :  { %1302 = vmatpush3.bf16.msra.mxu1 %v1390_v40  ;;  %1281 = vmatprep.subr.bf16.mxu0 %v1391_v41 }
 0x1e1   :  { %1303 = vmatprep.subr.bf16.mxu1 %v1392_v42 }
 0x1e3   :  { %1282 = vmatpush3.bf16.msra.mxu0 %v1393_v44 }
 0x1e4   :  { %1304 = vmatpush3.bf16.msra.mxu1 %v1394_v45  ;;  %1283 = vmatprep.subr.bf16.mxu0 %v1395_v46 }
 0x1e5   :  { %1305 = vmatprep.subr.bf16.mxu1 %v1396_v47 }
 0x1e7   :  { %1284 = vmatpush3.bf16.msra.mxu0 %v1397_v48 }
 0x1e8   :  { %1306 = vmatpush3.bf16.msra.mxu1 %v1398_v49  ;;  %1285 = vmatprep.subr.bf16.mxu0 %v1399_v50 }
 0x1e9   :  { %1307 = vmatprep.subr.bf16.mxu1 %v1400_v51 }
 0x1eb   :  { %1286 = vmatpush3.bf16.msra.mxu0 %v1401_v52 }
 0x1ec   :  { %1308 = vmatpush3.bf16.msra.mxu1 %v1402_v53 }
 0x1ee   :  { %1075 = vmatmul.mubr.bf16.vlgmr.msra.gmra.mrb[12].mxu0 %v439_v55 }
 0x1ef   :  { %1115 = vmatmul.mubr.bf16.vlgmr.msra.gmra.mrb[12].mxu1 %v441_v56 }
 0x2a1   :  { %v1243_v57 = vpop.f32.mrb[8].mxu0 }
 0x2a2   :  { %v1265_v58 = vpop.f32.mrb[8].mxu1  ;;  %v1244_v60 = vpop.f32.mrb[9].mxu0 }
 0x2a3   :  { %v1245_v61 = vadd.f32 %v1244_v60, %v1243_v57  ;;  %v1266_v62 = vpop.f32.mrb[9].mxu1  ;;  %v1246_v63 = vpop.f32.mrb[10].mxu0 }
 0x2a4   :  { %v1267_v0 = vadd.f32 %v1266_v62, %v1265_v58  ;;  %v1268_v1 = vpop.f32.mrb[10].mxu1  ;;  %v1247_v2 = vpop.f32.mrb[11].mxu0 }
 0x2a5   :  { %v997_v3 = vadd.f32 %v1245_v61, %v1162_v59  ;;  %v1269_v4 = vpop.f32.mrb[11].mxu1 }
 0x2a7   :  { %v1037_v5 = vadd.f32 %v1267_v0, %v997_v3 }
 0x2c1   :  { %v1287_v6 = vpop.f32.mrb[12].mxu0 }
 0x2c2   :  { %v1309_v7 = vpop.f32.mrb[12].mxu1  ;;  %v1288_v8 = vpop.f32.mrb[13].mxu0 }
 0x2c3   :  { %v1289_v9 = vadd.f32 %v1288_v8, %v1287_v6  ;;  %v1310_v10 = vpop.f32.mrb[13].mxu1  ;;  %v1290_v11 = vpop.f32.mrb[14].mxu0 }
 0x2c4   :  { %v1311_v12 = vadd.f32 %v1310_v10, %v1309_v7  ;;  %v1312_v13 = vpop.f32.mrb[14].mxu1  ;;  %v1291_v14 = vpop.f32.mrb[15].mxu0 }
 0x2c5   :  { %v1077_v15 = vadd.f32 %v1289_v9, %v1037_v5  ;;  %v1313_v16 = vpop.f32.mrb[15].mxu1 }
 0x2c7   :  { %v1117_v17 = vadd.f32 %v1311_v12, %v1077_v15 }
 0x2c9   :  { %1122 = vst [vmem:[#allocation10] sm:$0xff] %v1117_v17 }
 0x2ca   :  { %1518 = shalt.err (!%p1515_p8)
}
 0x2cb   :  { %s1519_s21 = scalar_lea.hbm %s1667_s5, 128 }
 0x2cc   :  { %p1520_p9 = scmp.ne.s32.totalorder %s1667_s5, %s1519_s21  ;;  %p1523_p10 = scmp.lt.u32.totalorder %s1519_s21, %s1667_s5 }
 0x2ce   :  { %p1525_p11 = pnand %p1523_p10, %p1520_p9 }
 0x2d0   :  { %1528 = shalt.err (!%p1525_p11)
}
 0x2d1   :  { %1132 = dma.vmem_to_hbm [thread:$0]  %s1130_s1, 128, %s1667_s5, [#allocation4]  }
 0x2d2   :  { %1535 = dma.done.wait [#allocation4], 128  }
 0x2d3   :  { %1536 = vsyncadd [#allocation4], 4294967168 }
 0x2d4   :  { %1136 = vsyncpa [#allocation3], 1 }
 0x2d5   :  { %1137 = vsyncpa [#allocation6], 1 }
 0x2d6   :  { %1138 = vsyncpa [#allocation9], 1 }
 0x2d7   :  { %1139 = vsyncpa [#allocation4], 1 }

</bundles_post_ra>
